<compile_context>
chip_gen: v6e
topology: v6e:2x2x1
jax: 0.10.0
libtpu: 0.0.40
codegen_flags: <defaults>
</compile_context>

<pallas_src>
import functools

import jax
import jax.numpy as jnp
from jax.experimental import pallas as pl
from jax.experimental.pallas import tpu as pltpu

LANE = 128      # TPU lane width (last dim)
SUBLANE = 8     # TPU sublane width (second-to-last dim, f32)


def _round_up(x: int, m: int) -> int:
    return (x + m - 1) // m * m


def _fused_autoencoder_kernel(x_ref, *refs, num_layers: int):
    """Fused MLP over one batch tile.

    refs = (w0, b0, w1, b1, ..., w_{n-1}, b_{n-1}, o_ref).
    Weights are bf16, pre-transposed to (in_pad, out_pad); biases are f32
    (1, out_pad).  The layer loop is unrolled at trace time, so intermediate
    activations never leave vregs/VMEM.
    """
    o_ref = refs[-1]
    h = x_ref[...]                                        # bf16 (TILE_B, in_pad0)
    for i in range(num_layers):
        w = refs[2 * i][...]                              # bf16 (in_pad_i, out_pad_i)
        b = refs[2 * i + 1][...]                          # f32  (1, out_pad_i)
        acc = jnp.dot(h, w, preferred_element_type=jnp.float32) + b
        if i != num_layers - 1:
            h = jnp.maximum(acc, 0.0).astype(jnp.bfloat16)  # ReLU, back to bf16 for MXU
        else:
            o_ref[...] = acc.astype(o_ref.dtype)


def init_autoencoder_params(key, config):
    """PyTorch-layout params: w is (out_features, in_features), b is (out_features,).

    Mirrors nn.Linear default init: U[-1/sqrt(fan_in), 1/sqrt(fan_in)].
    """
    params = []
    for fan_in, fan_out in config:
        key, kw, kb = jax.random.split(key, 3)
        bound = 1.0 / jnp.sqrt(jnp.float32(fan_in))
        w = jax.random.uniform(kw, (fan_out, fan_in), jnp.float32, -bound, bound)
        b = jax.random.uniform(kb, (fan_out,), jnp.float32, -bound, bound)
        params.append((w, b))
    return params


def pack_params(params):
    """Pre-transpose to (in, out) and pad *per layer* to lane-dense shapes.

    Weight i -> bf16 (round_up(fan_in_i,128), round_up(fan_out_i,128));
    bias i   -> f32  (1, round_up(fan_out_i,128)).
    Adjacent layers automatically agree on the shared dim (fan_out_i ==
    fan_in_{i+1}).  Zero-padded weight rows/cols and zero-padded bias keep the
    padded output lanes exactly zero through every layer.
    """
    packed = []
    for w, b in params:
        fan_out, fan_in = w.shape
        in_pad = _round_up(fan_in, LANE)
        out_pad = _round_up(fan_out, LANE)
        w_p = jnp.zeros((in_pad, out_pad), jnp.float32)
        w_p = w_p.at[:fan_in, :fan_out].set(w.T).astype(jnp.bfloat16)
        b_p = jnp.zeros((1, out_pad), jnp.float32)
        b_p = b_p.at[0, :fan_out].set(b)
        packed.append((w_p, b_p))
    return packed


@functools.partial(jax.jit, static_argnames=("out_features", "tile_b"))
def autoencoder_forward(x, packed_params, *, out_features: int, tile_b: int = 256):
    """Pad -> single fused pallas_call (batch grid, resident weights) -> slice."""
    batch, in_features = x.shape
    num_layers = len(packed_params)
    in_pad0 = packed_params[0][0].shape[0]
    out_pad = packed_params[-1][0].shape[1]

    # Batch tile: multiple of 8 sublanes, no larger than the (padded) batch.
    tile_b = _round_up(min(tile_b, _round_up(batch, SUBLANE)), SUBLANE)
    b_pad = _round_up(batch, tile_b)
    num_tiles = b_pad // tile_b

    # Pad (and cast to bf16) inside the jit so no extra HBM round-trip per call.
    x_p = jnp.zeros((b_pad, in_pad0), jnp.bfloat16)
    x_p = x_p.at[:batch, :in_features].set(x.astype(jnp.bfloat16))

    flat = []
    in_specs = [pl.BlockSpec((tile_b, in_pad0), lambda i: (i, 0))]
    for w, b in packed_params:
        flat.append(w)
        flat.append(b)
        # Weights / biases: full-array blocks, same block every grid step ->
        # VMEM-resident across all batch tiles (no re-fetch).
        in_specs.append(pl.BlockSpec(w.shape, lambda i: (0, 0)))
        in_specs.append(pl.BlockSpec(b.shape, lambda i: (0, 0)))
    out_specs = pl.BlockSpec((tile_b, out_pad), lambda i: (i, 0))

    # Cost estimate (padded sizes) for XLA scheduling around the custom call.
    flops = 0
    bytes_accessed = x_p.size * 2 + b_pad * out_pad * 4
    for w, b in packed_params:
        ip, op = w.shape
        flops += 2 * b_pad * ip * op
        bytes_accessed += w.size * 2 + b.size * 4
    cost = pl.CostEstimate(flops=flops, transcendentals=0,
                           bytes_accessed=bytes_accessed)

    # VMEM budget: resident weight stack + double-buffered activation tiles +
    # per-layer intermediates, with headroom; capped well below v7x's 64 MiB
    # physical VMEM (also safe on v5e's small default scoped VMEM).
    weight_bytes = sum(w.size * 2 + b.size * 4 for w, b in packed_params)
    io_bytes = 2 * (tile_b * in_pad0 * 2) + 2 * (tile_b * out_pad * 4)
    act_bytes = sum(tile_b * b.shape[1] * 6 for _, b in packed_params)
    vmem_limit = min(max(2 * (weight_bytes + io_bytes + act_bytes), 8 << 20),
                     48 << 20)

    kernel = functools.partial(_fused_autoencoder_kernel, num_layers=num_layers)

    out_p = pl.pallas_call(
        kernel,
        out_shape=jax.ShapeDtypeStruct((b_pad, out_pad), jnp.float32),
        grid_spec=pltpu.PrefetchScalarGridSpec(
            num_scalar_prefetch=0,
            grid=(num_tiles,),
            in_specs=in_specs,
            out_specs=out_specs,
        ),
        compiler_params=pltpu.CompilerParams(
            dimension_semantics=("parallel",),   # shard batch tiles across TCs (v7x)
            vmem_limit_bytes=int(vmem_limit),
        ),
        cost_estimate=cost,
    )(x_p, *flat)

    # Padded batch rows are garbage-by-design (bias propagates through ReLU);
    # padded feature lanes are exactly zero.  Slice both away.
    return out_p[:batch, :out_features]


if __name__ == "__main__":
    # config analogous to the PyTorch module's `config: list` of [in, out] pairs.
    config = [[32, 16], [16, 8], [8, 16], [16, 32]]
    batch = 40                      # deliberately NOT a multiple of 8/TILE_B
    out_features = config[-1][1]

    key = jax.random.PRNGKey(0)
    key, kx = jax.random.split(key)
    x = jax.random.normal(kx, (batch, config[0][0]), jnp.float32)

    params = init_autoencoder_params(key, config)
    packed = pack_params(params)

    # Small tile_b so the batch grid (3 steps) is actually exercised at this
    # toy size; real workloads should use tile_b=256+ (v6e/v7x) / 128+ (v5e).
    out = autoencoder_forward(x, packed, out_features=out_features, tile_b=16)
    jax.block_until_ready(out)

    # Pure-JAX reference emulating the kernel's bf16-operand / f32-accumulate
    # matmuls (so the comparison tolerance stays tight despite bf16 weights).
    ref = x
    for idx, (w, b) in enumerate(params):
        lhs = ref.astype(jnp.bfloat16).astype(jnp.float32)
        rhs = w.T.astype(jnp.bfloat16).astype(jnp.float32)
        ref = lhs @ rhs + b
        if idx != len(params) - 1:
            ref = jnp.maximum(ref, 0.0)

    assert out.shape == (batch, out_features)
    assert out.dtype == jnp.float32
    assert jnp.allclose(out, ref, atol=1e-2, rtol=1e-2)

    # Sanity vs. full-f32 math too (loose tolerance: bf16 weights/activations).
    ref32 = x
    for idx, (w, b) in enumerate(params):
        ref32 = ref32 @ w.T + b
        if idx != len(params) - 1:
            ref32 = jnp.maximum(ref32, 0.0)
    assert jnp.allclose(out, ref32, atol=5e-2, rtol=5e-2)

    print("KERNEL_OK")
</pallas_src>

<mosaic_0001>
module attributes {stable_mosaic.version = 11 : i64} {
  func.func @_fused_autoencoder_kernel(%arg0: i32, %arg1: memref<16x128xbf16, #tpu.memory_space<vmem>>, %arg2: memref<128x128xbf16, #tpu.memory_space<vmem>>, %arg3: memref<1x128xf32, #tpu.memory_space<vmem>>, %arg4: memref<128x128xbf16, #tpu.memory_space<vmem>>, %arg5: memref<1x128xf32, #tpu.memory_space<vmem>>, %arg6: memref<128x128xbf16, #tpu.memory_space<vmem>>, %arg7: memref<1x128xf32, #tpu.memory_space<vmem>>, %arg8: memref<128x128xbf16, #tpu.memory_space<vmem>>, %arg9: memref<1x128xf32, #tpu.memory_space<vmem>>, %arg10: memref<16x128xf32, #tpu.memory_space<vmem>>) attributes {dimension_semantics = [#tpu.dimension_semantics<parallel>], iteration_bounds = array<i64: 3>, scalar_prefetch = 0 : i64, scratch_operands = 0 : i64, tpu.core_type = #tpu.core_type<tc>, window_params = [{transform_indices = @transform_0, window_bounds = array<i64: 16, 128>}, {pipeline_mode = #tpu.pipeline_mode<synchronous>, transform_indices = @transform_1, window_bounds = array<i64: 128, 128>}, {pipeline_mode = #tpu.pipeline_mode<synchronous>, transform_indices = @transform_2, window_bounds = array<i64: 1, 128>}, {pipeline_mode = #tpu.pipeline_mode<synchronous>, transform_indices = @transform_3, window_bounds = array<i64: 128, 128>}, {pipeline_mode = #tpu.pipeline_mode<synchronous>, transform_indices = @transform_4, window_bounds = array<i64: 1, 128>}, {pipeline_mode = #tpu.pipeline_mode<synchronous>, transform_indices = @transform_5, window_bounds = array<i64: 128, 128>}, {pipeline_mode = #tpu.pipeline_mode<synchronous>, transform_indices = @transform_6, window_bounds = array<i64: 1, 128>}, {pipeline_mode = #tpu.pipeline_mode<synchronous>, transform_indices = @transform_7, window_bounds = array<i64: 128, 128>}, {pipeline_mode = #tpu.pipeline_mode<synchronous>, transform_indices = @transform_8, window_bounds = array<i64: 1, 128>}, {transform_indices = @transform_9, window_bounds = array<i64: 16, 128>}]} {
    %c0 = arith.constant 0 : index
    %c0_0 = arith.constant 0 : index
    %0 = vector.load %arg1[%c0, %c0_0] : memref<16x128xbf16, #tpu.memory_space<vmem>>, vector<16x128xbf16>
    %c0_1 = arith.constant 0 : index
    %c0_2 = arith.constant 0 : index
    %1 = vector.load %arg2[%c0_1, %c0_2] : memref<128x128xbf16, #tpu.memory_space<vmem>>, vector<128x128xbf16>
    %c0_3 = arith.constant 0 : index
    %c0_4 = arith.constant 0 : index
    %2 = vector.load %arg3[%c0_3, %c0_4] : memref<1x128xf32, #tpu.memory_space<vmem>>, vector<1x128xf32>
    %cst = arith.constant dense<0.000000e+00> : vector<16x128xf32>
    %3 = tpu.matmul %0, %1, %cst {dimension_numbers = #tpu.dot_dimension_numbers<[1], [0], [0], [1], [0, 0, 1, 1], [], []>} : vector<16x128xbf16>, vector<128x128xbf16>, vector<16x128xf32> -> vector<16x128xf32>
    %4 = vector.broadcast %2 : vector<1x128xf32> to vector<16x128xf32>
    %5 = arith.addf %3, %4 : vector<16x128xf32>
    %cst_5 = arith.constant 0.000000e+00 : f32
    %6 = vector.broadcast %cst_5 : f32 to vector<16x128xf32>
    %7 = arith.maximumf %5, %6 : vector<16x128xf32>
    %8 = arith.truncf %7 : vector<16x128xf32> to vector<16x128xbf16>
    %c0_6 = arith.constant 0 : index
    %c0_7 = arith.constant 0 : index
    %9 = vector.load %arg4[%c0_6, %c0_7] : memref<128x128xbf16, #tpu.memory_space<vmem>>, vector<128x128xbf16>
    %c0_8 = arith.constant 0 : index
    %c0_9 = arith.constant 0 : index
    %10 = vector.load %arg5[%c0_8, %c0_9] : memref<1x128xf32, #tpu.memory_space<vmem>>, vector<1x128xf32>
    %cst_10 = arith.constant dense<0.000000e+00> : vector<16x128xf32>
    %11 = tpu.matmul %8, %9, %cst_10 {dimension_numbers = #tpu.dot_dimension_numbers<[1], [0], [0], [1], [0, 0, 1, 1], [], []>} : vector<16x128xbf16>, vector<128x128xbf16>, vector<16x128xf32> -> vector<16x128xf32>
    %12 = vector.broadcast %10 : vector<1x128xf32> to vector<16x128xf32>
    %13 = arith.addf %11, %12 : vector<16x128xf32>
    %cst_11 = arith.constant 0.000000e+00 : f32
    %14 = vector.broadcast %cst_11 : f32 to vector<16x128xf32>
    %15 = arith.maximumf %13, %14 : vector<16x128xf32>
    %16 = arith.truncf %15 : vector<16x128xf32> to vector<16x128xbf16>
    %c0_12 = arith.constant 0 : index
    %c0_13 = arith.constant 0 : index
    %17 = vector.load %arg6[%c0_12, %c0_13] : memref<128x128xbf16, #tpu.memory_space<vmem>>, vector<128x128xbf16>
    %c0_14 = arith.constant 0 : index
    %c0_15 = arith.constant 0 : index
    %18 = vector.load %arg7[%c0_14, %c0_15] : memref<1x128xf32, #tpu.memory_space<vmem>>, vector<1x128xf32>
    %cst_16 = arith.constant dense<0.000000e+00> : vector<16x128xf32>
    %19 = tpu.matmul %16, %17, %cst_16 {dimension_numbers = #tpu.dot_dimension_numbers<[1], [0], [0], [1], [0, 0, 1, 1], [], []>} : vector<16x128xbf16>, vector<128x128xbf16>, vector<16x128xf32> -> vector<16x128xf32>
    %20 = vector.broadcast %18 : vector<1x128xf32> to vector<16x128xf32>
    %21 = arith.addf %19, %20 : vector<16x128xf32>
    %cst_17 = arith.constant 0.000000e+00 : f32
    %22 = vector.broadcast %cst_17 : f32 to vector<16x128xf32>
    %23 = arith.maximumf %21, %22 : vector<16x128xf32>
    %24 = arith.truncf %23 : vector<16x128xf32> to vector<16x128xbf16>
    %c0_18 = arith.constant 0 : index
    %c0_19 = arith.constant 0 : index
    %25 = vector.load %arg8[%c0_18, %c0_19] : memref<128x128xbf16, #tpu.memory_space<vmem>>, vector<128x128xbf16>
    %c0_20 = arith.constant 0 : index
    %c0_21 = arith.constant 0 : index
    %26 = vector.load %arg9[%c0_20, %c0_21] : memref<1x128xf32, #tpu.memory_space<vmem>>, vector<1x128xf32>
    %cst_22 = arith.constant dense<0.000000e+00> : vector<16x128xf32>
    %27 = tpu.matmul %24, %25, %cst_22 {dimension_numbers = #tpu.dot_dimension_numbers<[1], [0], [0], [1], [0, 0, 1, 1], [], []>} : vector<16x128xbf16>, vector<128x128xbf16>, vector<16x128xf32> -> vector<16x128xf32>
    %28 = vector.broadcast %26 : vector<1x128xf32> to vector<16x128xf32>
    %29 = arith.addf %27, %28 : vector<16x128xf32>
    %c0_23 = arith.constant 0 : index
    %c0_24 = arith.constant 0 : index
    %30 = vector.load %arg10[%c0_23, %c0_24] : memref<16x128xf32, #tpu.memory_space<vmem>>, vector<16x128xf32>
    tpu.vector_store %arg10[%c0_23, %c0_24], %29 {strides = array<i32>} : memref<16x128xf32, #tpu.memory_space<vmem>>, vector<16x128xf32>,
    return
  }
  func.func @transform_0(%arg0: i32) -> (i32, i32) {
    %c0_i32 = arith.constant 0 : i32
    %c0_i32_0 = arith.constant 0 : i32
    return %arg0, %c0_i32 : i32, i32
  }
  func.func @transform_1(%arg0: i32) -> (i32, i32) {
    %c0_i32 = arith.constant 0 : i32
    %c0_i32_0 = arith.constant 0 : i32
    %c0_i32_1 = arith.constant 0 : i32
    return %c0_i32, %c0_i32_0 : i32, i32
  }
  func.func @transform_2(%arg0: i32) -> (i32, i32) {
    %c0_i32 = arith.constant 0 : i32
    %c0_i32_0 = arith.constant 0 : i32
    %c0_i32_1 = arith.constant 0 : i32
    return %c0_i32, %c0_i32_0 : i32, i32
  }
  func.func @transform_3(%arg0: i32) -> (i32, i32) {
    %c0_i32 = arith.constant 0 : i32
    %c0_i32_0 = arith.constant 0 : i32
    %c0_i32_1 = arith.constant 0 : i32
    return %c0_i32, %c0_i32_0 : i32, i32
  }
  func.func @transform_4(%arg0: i32) -> (i32, i32) {
    %c0_i32 = arith.constant 0 : i32
    %c0_i32_0 = arith.constant 0 : i32
    %c0_i32_1 = arith.constant 0 : i32
    return %c0_i32, %c0_i32_0 : i32, i32
  }
  func.func @transform_5(%arg0: i32) -> (i32, i32) {
    %c0_i32 = arith.constant 0 : i32
    %c0_i32_0 = arith.constant 0 : i32
    %c0_i32_1 = arith.constant 0 : i32
    return %c0_i32, %c0_i32_0 : i32, i32
  }
  func.func @transform_6(%arg0: i32) -> (i32, i32) {
    %c0_i32 = arith.constant 0 : i32
    %c0_i32_0 = arith.constant 0 : i32
    %c0_i32_1 = arith.constant 0 : i32
    return %c0_i32, %c0_i32_0 : i32, i32
  }
  func.func @transform_7(%arg0: i32) -> (i32, i32) {
    %c0_i32 = arith.constant 0 : i32
    %c0_i32_0 = arith.constant 0 : i32
    %c0_i32_1 = arith.constant 0 : i32
    return %c0_i32, %c0_i32_0 : i32, i32
  }
  func.func @transform_8(%arg0: i32) -> (i32, i32) {
    %c0_i32 = arith.constant 0 : i32
    %c0_i32_0 = arith.constant 0 : i32
    %c0_i32_1 = arith.constant 0 : i32
    return %c0_i32, %c0_i32_0 : i32, i32
  }
  func.func @transform_9(%arg0: i32) -> (i32, i32) {
    %c0_i32 = arith.constant 0 : i32
    %c0_i32_0 = arith.constant 0 : i32
    return %arg0, %c0_i32 : i32, i32
  }
}

</mosaic_0001>

<bundles_post_ra>
// kernel: autoencoder_forward.1
= control target key start
LH: loop header
LB: loop body
LE: loop exit
PB: predicated region body
PF: predicated region fallthrough
CT: control target
= control target key end

     0   :  { %14 = vsyncpa [#allocation3], 0  ;;  %s1442_s0 = inlined_call_operand.vmem [shape: bf16[48,128], index: 0, kind: input, shape index: {}]   ;;  %s1443_s1 = inlined_call_operand.vmem [shape: bf16[128,128], index: 1, kind: input, shape index: {}]   ;;  %s1444_s2 = inlined_call_operand.vmem [shape: f32[1,128], index: 2, kind: input, shape index: {}]   ;;  %s1445_s3 = inlined_call_operand.vmem [shape: bf16[128,128], index: 3, kind: input, shape index: {}]   ;;  %s1446_s4 = inlined_call_operand.vmem [shape: f32[1,128], index: 4, kind: input, shape index: {}]   ;;  %s1447_s5 = inlined_call_operand.hbm [shape: bf16[128,128], index: 5, kind: input, shape index: {}]   ;;  %s1448_s6 = inlined_call_operand.vmem [shape: f32[1,128], index: 6, kind: input, shape index: {}]   ;;  %s1449_s7 = inlined_call_operand.hbm [shape: bf16[128,128], index: 7, kind: input, shape index: {}]   ;;  %s1450_s8 = inlined_call_operand.vmem [shape: f32[1,128], index: 8, kind: input, shape index: {}]   ;;  %s1451_s9 = inlined_call_operand.vmem [shape: f32[48,128], index: 9, kind: output, shape index: {}]  }
   0x1   :  { %15 = vsyncpa [#allocation5], 0  ;;  %s1270_s30 = smov 0  }
   0x2 LB: > { %s912_s10 = sadd.s32 4294967295, %s1212_s30   ;;  %p914_p0 = scmp.ge.s32.totalorder %s1212_s30, 1  ;;  %s1212_s30 = sphi %s1270_s30, %s21_s30  }
   0x3   : > { %p246_p1 = scmp.lt.s32.totalorder %s1212_s30, 4  ;;  %s1214_s11 = smov [#allocation2]  }
   0x4   : > { %s270_s12 = sshll.u32 %s1214_s11, 4  ;;  %p1284_p3 = scmp.eq.s32.totalorder %s912_s10, 0  ;;  %s271_s12 = int_to_ptr.vmem [resolvable:$true] %s270_s12 }
   0x5   : > { %p1278_p2 = pnand %p914_p0, %p246_p1  ;;  %s1215_s15 = smov [#allocation4]  }
   0x6   : > { %s286_s16 = sshll.u32 %s1215_s15, 4  ;;  %s1157_s18 = scalar_lea.vmem %s271_s12, 1024  ;;  %s287_s16 = int_to_ptr.vmem [resolvable:$true] %s286_s16 }
   0x7   : > { %p1088_p4 = pneg %p1278_p2  ;;  %p1158_p7 = scmp.ne.s32.totalorder %s271_s12, %s1157_s18 }
   0x8   : > { %p1165_p10 = scmp.lt.s32.totalorder %s271_s12, %s271_s12  ;;  %p1166_p11 = scmp.lt.s32.totalorder %s1157_s18, %s1157_s18 }
   0x9   : > { %p1292_p5 = pnand %p1284_p3, %p1088_p4 }
   0xa   : > { %p1167_p12 = por %p1166_p11, %p1165_p10 }
   0xb   : > { %p1148_p6 = pneg %p1292_p5 }
   0xd   : > { %p1160_p8 = pnand %p1158_p7, %p1148_p6 }
   0xf   : > { %p1161_p9 = pneg %p1160_p8 }
  0x11   : > { %p1168_p13 = pnand %p1167_p12, %p1161_p9 }
  0x13   : > { %1171 = shalt.err (!%p1168_p13)
}
  0x14   : > { %s1216_s19 = smov 64   ;;  %s1217_s20 = smov 4  }
  0x15   : > { %1091 = dma.hbm_to_vmem [thread:$0]  (!%p1292_p5), %s1447_s5, 1024, %s271_s12, [#allocation3], %s1216_s19, %s1216_s19, %s1217_s20  }
  0x16   : > { %s1183_s23 = scalar_lea.vmem %s287_s16, 1024  ;;  %p1191_p7 = scmp.lt.s32.totalorder %s287_s16, %s287_s16 }
  0x17   : > { %p1184_p0 = scmp.ne.s32.totalorder %s287_s16, %s1183_s23  ;;  %p1192_p8 = scmp.lt.s32.totalorder %s1183_s23, %s1183_s23 }
  0x19   : > { %p1186_p1 = pnand %p1184_p0, %p1148_p6  ;;  %p1193_p10 = por %p1192_p8, %p1191_p7 }
  0x1b   : > { %p1187_p4 = pneg %p1186_p1 }
  0x1d   : > { %p1194_p9 = pnand %p1193_p10, %p1187_p4 }
  0x1f   : > { %1197 = shalt.err (!%p1194_p9)
}
  0x20   : > { %1094 = dma.hbm_to_vmem [thread:$0]  (!%p1292_p5), %s1449_s7, 1024, %s287_s16, [#allocation5], %s1216_s19, %s1216_s19, %s1217_s20  }
  0x21   : > { %314 = sbr.rel (%p1278_p2) target bundleno = 884 (0x374), region = 56 }
  0x26   : > { %1203 = dma.done.wait (%p1284_p3), [#allocation3], 1024  }
  0x27   : > { %1205 = vsyncadd (%p1284_p3), [#allocation3], 4294966272 }
  0x28   : > { %1207 = dma.done.wait (%p1284_p3), [#allocation5], 1024  }
  0x29   : > { %1209 = vsyncadd (%p1284_p3), [#allocation5], 4294966272  ;;  %s921_s26 = sshll.u32 %s912_s10, 1  ;;  %v1218_v0 = vmov 0.0   ;;  %vm1219_vm0 = vmmov 0   ;;  %v1113_v1 = vld [vmem:[%s1443_s1 + $0x38] sm:$0xff]  }
  0x2a   : > { %1000 = vmatprep.subr.bf16.mxu0 %v1218_v0  ;;  %1016 = vmatprep.mubr.msk.bf16.mxu0 %vm1219_vm0, %v1218_v0  ;;  %p355_p2 = scmp.lt.s32.totalorder %s921_s26, 5  ;;  %v1114_v2 = vld [vmem:[%s1443_s1 + $0x30] sm:$0xff]   ;;  %v1115_v3 = vld [vmem:[%s1443_s1 + $0x28] sm:$0xff]   ;;  %v1122_v4 = vld [vmem:[%s1445_s3 + $0x38] sm:$0xff]  }
  0x2b   : > { %1020 = vmatprep.subr.bf16.mxu1 %v1218_v0  ;;  %1036 = vmatprep.mubr.msk.bf16.mxu1 %vm1219_vm0, %v1218_v0  ;;  %v1116_v5 = vld [vmem:[%s1443_s1 + $0x20] sm:$0xff]   ;;  %v1123_v6 = vld [vmem:[%s1445_s3 + $0x30] sm:$0xff]   ;;  %v1117_v7 = vld [vmem:[%s1443_s1 + $0x18] sm:$0xff]  }
  0x2c   : > { %s1456_s26 = smov (!%p355_p2, %s921_s26), 5  ;;  %1001 = vmatpush3.bf16.msra.mxu0 %v1113_v1  ;;  %1021 = vmatpush3.bf16.msra.mxu1 %v1122_v4  ;;  %v1124_v8 = vld [vmem:[%s1445_s3 + $0x28] sm:$0xff]   ;;  %v1118_v9 = vld [vmem:[%s1443_s1 + $0x10] sm:$0xff]   ;;  %v1125_v10 = vld [vmem:[%s1445_s3 + $0x20] sm:$0xff]  }
  0x2d   : > { %1002 = vmatprep.subr.bf16.mxu0 %v1218_v0  ;;  %s922_s11 = sshll.u32 %s1456_s26, 2  ;;  %1022 = vmatprep.subr.bf16.mxu1 %v1218_v0  ;;  %v1119_v11 = vld [vmem:[%s1443_s1 + $0x8] sm:$0xff]   ;;  %v1126_v12 = vld [vmem:[%s1445_s3 + $0x18] sm:$0xff]   ;;  %v1120_v13 = vld [vmem:[%s1443_s1] sm:$0xff]  }
  0x2e   : > { %s1349_s16 = scalar_lea.vmem %s1442_s0, %s922_s11  ;;  %v1127_v15 = vld [vmem:[%s1445_s3 + $0x10] sm:$0xff]   ;;  %v1128_v16 = vld [vmem:[%s1445_s3 + $0x8] sm:$0xff]   ;;  %v1129_v17 = vld [vmem:[%s1445_s3] sm:$0xff]   ;;  %s924_s11 = sshll.u32 %s1456_s26, 3 }
  0x2f   : > { %v1121_v14 = vld [vmem:[%s1349_s16] sm:$0xff]   ;;  %v1130_v18 = vld [vmem:[#allocation2 + $0x38] sm:$0xff]   ;;  %v1131_v19 = vld [vmem:[#allocation2 + $0x30] sm:$0xff]   ;;  %s364_s17 = scalar_lea.vmem %s1451_s9, %s924_s11 }
  0x30   : > { %1003 = vmatpush3.bf16.msra.mxu0 %v1114_v2  ;;  %1023 = vmatpush3.bf16.msra.mxu1 %v1123_v6  ;;  %v1132_v20 = vld [vmem:[#allocation2 + $0x28] sm:$0xff]   ;;  %v1133_v21 = vld [vmem:[#allocation2 + $0x20] sm:$0xff]   ;;  %v1134_v22 = vld [vmem:[#allocation2 + $0x18] sm:$0xff]  }
  0x31   : > { %1004 = vmatprep.subr.bf16.mxu0 %v1218_v0  ;;  %1024 = vmatprep.subr.bf16.mxu1 %v1218_v0  ;;  %v925_v23 = vld [vmem:[%s1444_s2] ss:$0 sm:$0xff]  ;;  %v1135_v33 = vld [vmem:[#allocation2 + $0x10] sm:$0xff]   ;;  %v1136_v34 = vld [vmem:[#allocation2 + $0x8] sm:$0xff]  }
  0x32   : > { %v1137_v35 = vld [vmem:[#allocation2] sm:$0xff]   ;;  %v1138_v36 = vld [vmem:[#allocation4 + $0x38] sm:$0xff]   ;;  %v1139_v37 = vld [vmem:[#allocation4 + $0x30] sm:$0xff]  }
  0x33   : > { %v1140_v38 = vld [vmem:[#allocation4 + $0x28] sm:$0xff]   ;;  %v1141_v39 = vld [vmem:[#allocation4 + $0x20] sm:$0xff]   ;;  %v1142_v40 = vld [vmem:[#allocation4 + $0x18] sm:$0xff]  }
  0x34   : > { %1005 = vmatpush3.bf16.msra.mxu0 %v1115_v3  ;;  %1025 = vmatpush3.bf16.msra.mxu1 %v1124_v8  ;;  %v935_v41 = vld [vmem:[%s1446_s4] ss:$0 sm:$0xff]  ;;  %v1143_v51 = vld [vmem:[#allocation4 + $0x10] sm:$0xff]   ;;  %v1144_v52 = vld [vmem:[#allocation4 + $0x8] sm:$0xff]  }
  0x35   : > { %1006 = vmatprep.subr.bf16.mxu0 %v1218_v0  ;;  %1026 = vmatprep.subr.bf16.mxu1 %v1218_v0  ;;  %v1145_v53 = vld [vmem:[#allocation4] sm:$0xff]  }
  0x36   : > { %v944_v54 = vld [vmem:[%s1448_s6] ss:$0 sm:$0xff] }
  0x38   : > { %1007 = vmatpush3.bf16.msra.mxu0 %v1116_v5  ;;  %1027 = vmatpush3.bf16.msra.mxu1 %v1125_v10 }
  0x39   : > { %1008 = vmatprep.subr.bf16.mxu0 %v1218_v0  ;;  %1028 = vmatprep.subr.bf16.mxu1 %v1218_v0 }
  0x3c   : > { %1009 = vmatpush3.bf16.msra.mxu0 %v1117_v7  ;;  %1029 = vmatpush3.bf16.msra.mxu1 %v1126_v12 }
  0x3d   : > { %1010 = vmatprep.subr.bf16.mxu0 %v1218_v0  ;;  %1030 = vmatprep.subr.bf16.mxu1 %v1218_v0 }
  0x40   : > { %1011 = vmatpush3.bf16.msra.mxu0 %v1118_v9  ;;  %1031 = vmatpush3.bf16.msra.mxu1 %v1127_v15 }
  0x41   : > { %1012 = vmatprep.subr.bf16.mxu0 %v1218_v0  ;;  %1032 = vmatprep.subr.bf16.mxu1 %v1218_v0 }
  0x44   : > { %1013 = vmatpush3.bf16.msra.mxu0 %v1119_v11  ;;  %1033 = vmatpush3.bf16.msra.mxu1 %v1128_v16 }
  0x45   : > { %1014 = vmatprep.subr.bf16.mxu0 %v1218_v0  ;;  %1034 = vmatprep.subr.bf16.mxu1 %v1218_v0 }
  0x48   : > { %1015 = vmatpush3.bf16.msra.mxu0 %v1120_v13  ;;  %1035 = vmatpush3.bf16.msra.mxu1 %v1129_v17 }
  0x49   : > { %1040 = vmatprep.subr.bf16.mxu0 %v1218_v0  ;;  %1060 = vmatprep.subr.bf16.mxu1 %v1218_v0 }
  0x4b   : > { %1017 = vmatmul.mubr.bf16.vlgmr.msra.gmra.mxu0 %v1121_v14 }
  0x4c   : > { %1056 = vmatprep.mubr.msk.bf16.mxu0 %vm1219_vm0, %v1218_v0  ;;  %1041 = vmatpush3.bf16.msra.mxu0 %v1130_v18 }
  0x4d   : > { %1042 = vmatprep.subr.bf16.mxu0 %v1218_v0 }
  0x50   : > { %1043 = vmatpush3.bf16.msra.mxu0 %v1131_v19 }
  0x51   : > { %1044 = vmatprep.subr.bf16.mxu0 %v1218_v0 }
  0x54   : > { %1045 = vmatpush3.bf16.msra.mxu0 %v1132_v20 }
  0x55   : > { %1046 = vmatprep.subr.bf16.mxu0 %v1218_v0 }
  0x58   : > { %1047 = vmatpush3.bf16.msra.mxu0 %v1133_v21 }
  0x59   : > { %1048 = vmatprep.subr.bf16.mxu0 %v1218_v0 }
  0x5c   : > { %1049 = vmatpush3.bf16.msra.mxu0 %v1134_v22 }
  0x5d   : > { %1050 = vmatprep.subr.bf16.mxu0 %v1218_v0 }
  0x60   : > { %1051 = vmatpush3.bf16.msra.mxu0 %v1135_v33 }
  0x61   : > { %1052 = vmatprep.subr.bf16.mxu0 %v1218_v0 }
  0x64   : > { %1053 = vmatpush3.bf16.msra.mxu0 %v1136_v34 }
  0x65   : > { %1054 = vmatprep.subr.bf16.mxu0 %v1218_v0 }
  0x68   : > { %1055 = vmatpush3.bf16.msra.mxu0 %v1137_v35 }
 0x10b   : > { %v480_v24 = vpop.f32.mrf.mxu0 }
 0x10c   : > { %v481_v26 = vadd.f32 %v925_v23, %v480_v24 }
 0x10d   : > { %v1018_v25 = vpop.f32.mrf.mxu0 }
 0x10e   : > { %v487_v30 = vmax.f32 %v481_v26, 0.0 }
 0x10f   : > { %v483_v27 = vpop.f32.mrf.mxu0 }
 0x110   : > { %v484_v28 = vadd.f32 %v925_v23, %v483_v27 }
 0x111   : > { %v1019_v29 = vpop.f32.mrf.mxu0 }
 0x112   : > { %v488_v31 = vmax.f32 %v484_v28, 0.0 }
 0x114   : > { %v489_v32 = vpack.c.bf16 %v488_v31, %v487_v30 }
 0x116   : > { %1037 = vmatmul.mubr.bf16.vlgmr.msra.gmra.mxu1 %v489_v32 }
 0x117   : > { %1076 = vmatprep.mubr.msk.bf16.mxu1 %vm1219_vm0, %v1218_v0  ;;  %1061 = vmatpush3.bf16.msra.mxu1 %v1138_v36 }
 0x118   : > { %1062 = vmatprep.subr.bf16.mxu1 %v1218_v0 }
 0x11b   : > { %1063 = vmatpush3.bf16.msra.mxu1 %v1139_v37 }
 0x11c   : > { %1064 = vmatprep.subr.bf16.mxu1 %v1218_v0 }
 0x11f   : > { %1065 = vmatpush3.bf16.msra.mxu1 %v1140_v38 }
 0x120   : > { %1066 = vmatprep.subr.bf16.mxu1 %v1218_v0 }
 0x123   : > { %1067 = vmatpush3.bf16.msra.mxu1 %v1141_v39 }
 0x124   : > { %1068 = vmatprep.subr.bf16.mxu1 %v1218_v0 }
 0x127   : > { %1069 = vmatpush3.bf16.msra.mxu1 %v1142_v40 }
 0x128   : > { %1070 = vmatprep.subr.bf16.mxu1 %v1218_v0 }
 0x12b   : > { %1071 = vmatpush3.bf16.msra.mxu1 %v1143_v51 }
 0x12c   : > { %1072 = vmatprep.subr.bf16.mxu1 %v1218_v0 }
 0x12f   : > { %1073 = vmatpush3.bf16.msra.mxu1 %v1144_v52 }
 0x130   : > { %1074 = vmatprep.subr.bf16.mxu1 %v1218_v0  ;;  %v953_v0 = vld [vmem:[%s1450_s8] ss:$0 sm:$0xff] }
 0x133   : > { %1075 = vmatpush3.bf16.msra.mxu1 %v1145_v53 }
 0x1d6   : > { %v595_v42 = vpop.f32.mrf.mxu1 }
 0x1d7   : > { %v596_v44 = vadd.f32 %v935_v41, %v595_v42 }
 0x1d8   : > { %v1038_v43 = vpop.f32.mrf.mxu1 }
 0x1d9   : > { %v602_v48 = vmax.f32 %v596_v44, 0.0 }
 0x1da   : > { %v598_v45 = vpop.f32.mrf.mxu1 }
 0x1db   : > { %v599_v46 = vadd.f32 %v935_v41, %v598_v45 }
 0x1dc   : > { %v1039_v47 = vpop.f32.mrf.mxu1 }
 0x1dd   : > { %v603_v49 = vmax.f32 %v599_v46, 0.0 }
 0x1df   : > { %v604_v50 = vpack.c.bf16 %v603_v49, %v602_v48 }
 0x1e1   : > { %1057 = vmatmul.mubr.bf16.vlgmr.msra.gmra.mxu0 %v604_v50 }
 0x2a1   : > { %v710_v55 = vpop.f32.mrf.mxu0 }
 0x2a2   : > { %v711_v57 = vadd.f32 %v944_v54, %v710_v55 }
 0x2a3   : > { %v1058_v56 = vpop.f32.mrf.mxu0 }
 0x2a4   : > { %v717_v61 = vmax.f32 %v711_v57, 0.0 }
 0x2a5   : > { %v713_v58 = vpop.f32.mrf.mxu0 }
 0x2a6   : > { %v714_v59 = vadd.f32 %v944_v54, %v713_v58 }
 0x2a7   : > { %v1059_v60 = vpop.f32.mrf.mxu0 }
 0x2a8   : > { %v718_v62 = vmax.f32 %v714_v59, 0.0 }
 0x2aa   : > { %v719_v63 = vpack.c.bf16 %v718_v62, %v717_v61 }
 0x2ac   : > { %1077 = vmatmul.mubr.bf16.vlgmr.msra.gmra.mxu1 %v719_v63 }
 0x36c   : > { %v825_v1 = vpop.f32.mrf.mxu1 }
 0x36d   : > { %v826_v2 = vadd.f32 %v953_v0, %v825_v1 }
 0x36e   : > { %v1078_v3 = vpop.f32.mrf.mxu1 }
 0x36f   : > { %832 = vst [vmem:[%s364_s17] sm:$0xff] %v826_v2 }
 0x370   : > { %v828_v4 = vpop.f32.mrf.mxu1 }
 0x371   : > { %v829_v5 = vadd.f32 %v953_v0, %v828_v4 }
 0x372   : > { %v1079_v6 = vpop.f32.mrf.mxu1 }
 0x373   : > { %833 = vst [vmem:[%s364_s17 + $0x8] sm:$0xff] %v829_v5 }
 0x374 PF: > { %s21_s30 = sadd.s32 1, %s1212_s30  }
 0x375   : > { %p18_p3 = scmp.ge.s32.totalorder %s21_s30, 5  }
 0x377   :  { %20 = sbr.rel (!%p18_p3) target bundleno = 2 (0x2), region = 95 }
 0x37c   :  { %856 = vsyncpa [#allocation3], 1 }
 0x37d   :  { %858 = vsyncpa [#allocation3 + $0x1], 1 }
 0x37e   :  { %859 = vsyncpa [#allocation5], 1 }

</bundles_post_ra>
